<compile_context>
chip_gen: v5e
topology: v5e:2x2
jax: 0.10.0
libtpu: 0.0.40
codegen_flags: <defaults>
</compile_context>

<pallas_src>
import functools
import numpy as np
import jax
import jax.numpy as jnp
from jax.experimental import pallas as pl
from jax.experimental.pallas import tpu as pltpu

EPS = 1e-3                        # BatchNorm eps in the reference module
MATMUL_VMEM = 48 * 1024 * 1024    # <=48 MiB is safe on v7x (64 MiB phys); can be
                                  # raised to 64-96 MiB on v5e/v6e (128 MiB VMEM)
BLOCK_VMEM = 32 * 1024 * 1024     # fused block / head kernels (tiny working sets)


def _rup(x, m=128):
    return ((x + m - 1) // m) * m


def _pad1(v, n):
    return jnp.pad(v, (0, n - v.shape[0]))


def _pad2(w, r, c):
    return jnp.pad(w, ((0, r - w.shape[0]), (0, c - w.shape[1])))


# ----------------------------------------------------------------------------
# Pallas kernels
# ----------------------------------------------------------------------------

def _matmul_bn_kernel(x_ref, w_ref, sb_ref, o_ref):
    a = x_ref[...].astype(jnp.bfloat16)                         # bf16 into the MXU
    y = jnp.dot(a, w_ref[...], preferred_element_type=jnp.float32)
    sb = sb_ref[...]
    y = y * sb[0:1, :] + sb[1:2, :]                             # folded BatchNorm
    o_ref[...] = y.astype(o_ref.dtype)


def matmul_bn(x, w, sb, *, out_dtype=jnp.bfloat16, tm=512, tn=256):
    """(x @ w) * scale + bias, tiled over (M, N); N is already lane-dense (x128)."""
    M, K = x.shape
    Np = w.shape[1]
    assert Np % 128 == 0
    tn = min(tn, Np)
    if M <= tm:
        tm = _rup(M, 16)           # single M tile; no ~2x padding waste for small M
    Mp = _rup(M, tm)
    if Mp != M:
        x = jnp.pad(x, ((0, Mp - M), (0, 0)))
    out = pl.pallas_call(
        _matmul_bn_kernel,
        out_shape=jax.ShapeDtypeStruct((Mp, Np), out_dtype),
        grid=(Mp // tm, Np // tn),
        in_specs=[
            pl.BlockSpec((tm, K), lambda i, j: (i, 0)),
            pl.BlockSpec((K, tn), lambda i, j: (0, j)),
            pl.BlockSpec((2, tn), lambda i, j: (0, j)),
        ],
        out_specs=pl.BlockSpec((tm, tn), lambda i, j: (i, j)),
        compiler_params=pltpu.CompilerParams(
            dimension_semantics=("parallel", "parallel"),
            vmem_limit_bytes=MATMUL_VMEM),
    )(x, w, sb)
    return out[:M]


def _shift_rows(x, d):
    """Return r with r[i] = x[(i + d) mod HW]; the caller masks wrapped rows."""
    hw = x.shape[0]
    if d % hw == 0:
        return x
    s = (-d) % hw
    if hw % 8 == 0:
        return pltpu.roll(x, shift=s, axis=0)      # XLU sublane rotate (no masked vst)
    # tiny late-stage maps (hw < 8): rotate via two slices + concat, negligible cost
    return jnp.concatenate([x[hw - s:], x[:hw - s]], axis=0)


def _mbconv_kernel(x_ref, w_exp_ref, vec_cm_ref, w_dw_ref, w_se1_ref, b_se1_ref,
                   w_se2_ref, w_proj_ref, vec_co_ref, o_ref,
                   *, k, ho, wo, shortcut):
    """One full MBvo/MBConv block for one batch element, fully resident in VMEM."""
    hw = ho * wo
    pad = k // 2
    x2d = x_ref[0]                                              # (HW, Cin_p) bf16

    vec = vec_cm_ref[...]                                       # (5, Cm_p) f32
    s_exp, b_exp, s_dw, b_dw, b_se2 = (vec[i:i + 1, :] for i in range(5))

    # --- 1x1 expand conv + BN + SiLU (MXU, bf16 in / f32 accumulate) ---
    h = jnp.dot(x2d, w_exp_ref[...], preferred_element_type=jnp.float32)
    h = h * s_exp + b_exp
    h = h * jax.nn.sigmoid(h)                                   # (HW, Cm_p) f32

    # --- depthwise KxK conv (stride 1, zero pad), kept in the flat lane-dense
    #     (HW, Cm) layout: each tap = XLU row-rotate + border mask.  No padded
    #     spatial scratch, no masked scatter/gather, no whole-buffer zeroing. ---
    # TODO(synk): at real resolutions, tile this loop in row groups (fori_loop,
    #             unroll=True) to bound live ranges of h / acc.
    idx = jax.lax.broadcasted_iota(jnp.int32, (hw, 1), 0)
    row = idx // wo
    col = idx - row * wo
    wdw = w_dw_ref[...]                                         # (k*k, Cm_p) f32
    acc = jnp.zeros_like(h)
    for kh in range(k):
        dh = kh - pad
        rvalid = jnp.logical_and(row >= -dh, row <= ho - 1 - dh)
        for kw in range(k):
            dw = kw - pad
            cvalid = jnp.logical_and(col >= -dw, col <= wo - 1 - dw)
            tap = _shift_rows(h, dh * wo + dw)
            tap = jnp.where(jnp.logical_and(rvalid, cvalid), tap, 0.0)
            acc = acc + tap * wdw[kh * k + kw:kh * k + kw + 1, :]
    acc = acc * s_dw + b_dw
    acc = acc * jax.nn.sigmoid(acc)                             # (HW, Cm_p)

    # --- squeeze-and-excitation (pool -> FC -> SiLU -> FC -> sigmoid -> scale) ---
    pooled = jnp.mean(acc, axis=0, keepdims=True)               # (1, Cm_p)
    se = jnp.dot(pooled.astype(jnp.bfloat16), w_se1_ref[...],
                 preferred_element_type=jnp.float32) + b_se1_ref[...]
    se = se * jax.nn.sigmoid(se)
    se = jnp.dot(se.astype(jnp.bfloat16), w_se2_ref[...],
                 preferred_element_type=jnp.float32) + b_se2
    se = jax.nn.sigmoid(se)                                     # (1, Cm_p)
    scaled = acc * se                                           # x_se * x_residual

    # --- project 1x1 conv + BN (no act), shortcut add fused ---
    vo = vec_co_ref[...]                                        # (2, Cout_p)
    y = jnp.dot(scaled.astype(jnp.bfloat16), w_proj_ref[...],
                preferred_element_type=jnp.float32)
    y = y * vo[0:1, :] + vo[1:2, :]
    if shortcut:
        y = y + x2d.astype(jnp.float32)
    o_ref[0] = y.astype(o_ref.dtype)


def mbconv_apply(x, p, *, k, ho, wo, shortcut):
    """Fused MBvo/MBConv block; x: (N, Ho*Wo, Cin_p) bf16, channels lane-padded."""
    N, HW, cinp = x.shape
    cmp_ = p["w_exp"].shape[1]
    crp = p["w_se1"].shape[1]
    coutp = p["w_proj"].shape[1]
    rep = lambda n: (0, 0)
    # TODO(synk): add a spatial tile axis (with halo rows) to the grid so v7x's two
    #             TensorCores get pipelined work at real resolutions.
    return pl.pallas_call(
        functools.partial(_mbconv_kernel, k=k, ho=ho, wo=wo, shortcut=shortcut),
        out_shape=jax.ShapeDtypeStruct((N, HW, coutp), jnp.bfloat16),
        grid=(N,),
        in_specs=[
            pl.BlockSpec((1, HW, cinp), lambda n: (n, 0, 0)),
            pl.BlockSpec((cinp, cmp_), rep),
            pl.BlockSpec((5, cmp_), rep),
            pl.BlockSpec((k * k, cmp_), rep),
            pl.BlockSpec((cmp_, crp), rep),
            pl.BlockSpec((1, crp), rep),
            pl.BlockSpec((crp, cmp_), rep),
            pl.BlockSpec((cmp_, coutp), rep),
            pl.BlockSpec((2, coutp), rep),
        ],
        out_specs=pl.BlockSpec((1, HW, coutp), lambda n: (n, 0, 0)),
        compiler_params=pltpu.CompilerParams(
            dimension_semantics=("parallel",),
            vmem_limit_bytes=BLOCK_VMEM),
    )(x, p["w_exp"], p["vec_cm"], p["w_dw"], p["w_se1"], p["b_se1"],
      p["w_se2"], p["w_proj"], p["vec_co"])


def _head_kernel(x_ref, w9_ref, sb9_ref, wh_ref, bh_ref, o_ref):
    x2d = x_ref[0]                                              # (HW, C7_p) bf16
    sb = sb9_ref[...]
    # stage9: 1x1 conv + BN + SiLU
    y = jnp.dot(x2d, w9_ref[...], preferred_element_type=jnp.float32)
    y = y * sb[0:1, :] + sb[1:2, :]
    y = y * jax.nn.sigmoid(y)
    # AdaptiveAvgPool2d((1,1)); dropout is identity in eval mode
    pooled = jnp.mean(y, axis=0, keepdims=True)                 # (1, C8_p)
    o_ref[0] = jnp.dot(pooled.astype(jnp.bfloat16), wh_ref[...],
                       preferred_element_type=jnp.float32) + bh_ref[...]


def head_apply(x, p9, w_head, b_head, num_classes):
    """Fused stage9 + global-avg-pool + classifier. x: (N, HW, C7_p) bf16."""
    N, HW, c7p = x.shape
    c8p = p9["w"].shape[1]
    ncp = w_head.shape[1]
    rep = lambda n: (0, 0)
    out = pl.pallas_call(
        _head_kernel,
        out_shape=jax.ShapeDtypeStruct((N, 1, ncp), jnp.float32),
        grid=(N,),
        in_specs=[
            pl.BlockSpec((1, HW, c7p), lambda n: (n, 0, 0)),
            pl.BlockSpec((c7p, c8p), rep),
            pl.BlockSpec((2, c8p), rep),
            pl.BlockSpec((c8p, ncp), rep),
            pl.BlockSpec((1, ncp), rep),
        ],
        out_specs=pl.BlockSpec((1, 1, ncp), lambda n: (n, 0, 0)),
        compiler_params=pltpu.CompilerParams(
            dimension_semantics=("parallel",),
            vmem_limit_bytes=BLOCK_VMEM),
    )(x, p9["w"], p9["sb"], w_head, b_head)
    return out[:, 0, :num_classes]


# ----------------------------------------------------------------------------
# Plain-JAX glue
# ----------------------------------------------------------------------------

def upsample_bilinear(x, scale):
    """nn.Upsample(scale_factor=scale, mode='bilinear', align_corners=False). x: NCHW."""
    N, C, H, W = x.shape
    Ho, Wo = int(H * scale), int(W * scale)

    def coords(out_size, in_size):
        o = jnp.arange(out_size, dtype=jnp.float32)
        src = (o + 0.5) * (in_size / out_size) - 0.5
        src = jnp.clip(src, 0.0, in_size - 1.0)
        i0 = jnp.floor(src).astype(jnp.int32)
        i1 = jnp.minimum(i0 + 1, in_size - 1)
        f = src - i0.astype(jnp.float32)
        return i0, i1, f

    h0, h1, hf = coords(Ho, H)
    w0, w1, wf = coords(Wo, W)
    top = (x[:, :, h0, :] * (1 - hf)[None, None, :, None]
           + x[:, :, h1, :] * hf[None, None, :, None])
    return (top[:, :, :, w0] * (1 - wf)[None, None, None, :]
            + top[:, :, :, w1] * wf[None, None, None, :])


def im2col(x, k, stride, pad):
    """x: NHWC -> (N, Ho, Wo, k*k*C) patches, ordered (kh, kw, cin)."""
    N, H, W, C = x.shape
    xp = jnp.pad(x, ((0, 0), (pad, pad), (pad, pad), (0, 0)))
    Ho = (H + 2 * pad - k) // stride + 1
    Wo = (W + 2 * pad - k) // stride + 1
    cols = []
    for kh in range(k):
        for kw in range(k):
            cols.append(xp[:, kh:kh + (Ho - 1) * stride + 1:stride,
                           kw:kw + (Wo - 1) * stride + 1:stride, :])
    return jnp.concatenate(cols, axis=-1), Ho, Wo


# ----------------------------------------------------------------------------
# Deterministic parameter construction (lane-padded, matmul weights in bf16)
# ----------------------------------------------------------------------------

def _bn_fold(key, c):
    kg, kb = jax.random.split(key)
    gamma = 1.0 + 0.1 * jax.random.normal(kg, (c,), jnp.float32)
    beta = 0.1 * jax.random.normal(kb, (c,), jnp.float32)
    # eval-mode BN with fresh running stats (mean=0, var=1) folded into scale/bias.
    # TODO(synk): fold real running_mean/var here when loading a trained checkpoint.
    return gamma / jnp.sqrt(1.0 + EPS), beta


def _init_block(key, cin, cout, k, expand, r):
    cm, cr = cin * expand, cin * expand * r
    cinp, cmp_, crp, coutp = _rup(cin), _rup(cm), _rup(cr), _rup(cout)
    ks = jax.random.split(key, 8)
    w_exp = jax.random.normal(ks[0], (cin, cm), jnp.float32) / np.sqrt(cin)
    s_exp, b_exp = _bn_fold(ks[1], cm)
    w_dw = jax.random.normal(ks[2], (k * k, cm), jnp.float32) / np.sqrt(k * k)
    s_dw, b_dw = _bn_fold(ks[3], cm)
    w_se1 = jax.random.normal(ks[4], (cm, cr), jnp.float32) / np.sqrt(cm)
    w_se2 = jax.random.normal(ks[5], (cr, cm), jnp.float32) / np.sqrt(cr)
    w_proj = jax.random.normal(ks[6], (cm, cout), jnp.float32) / np.sqrt(cm)
    s_proj, b_proj = _bn_fold(ks[7], cout)
    # Padded channels carry exact zeros end-to-end: zero weight rows/cols + zero
    # biases keep them at 0 through SiLU / SE / project / shortcut.
    vec_cm = jnp.stack([_pad1(s_exp, cmp_), _pad1(b_exp, cmp_),
                        _pad1(s_dw, cmp_), _pad1(b_dw, cmp_),
                        jnp.zeros((cmp_,), jnp.float32)])        # b_se2 = 0
    vec_co = jnp.stack([_pad1(s_proj, coutp), _pad1(b_proj, coutp)])
    return dict(
        w_exp=_pad2(w_exp, cinp, cmp_).astype(jnp.bfloat16),
        vec_cm=vec_cm,
        w_dw=_pad2(w_dw, k * k, cmp_),
        w_se1=_pad2(w_se1, cmp_, crp).astype(jnp.bfloat16),
        b_se1=jnp.zeros((1, crp), jnp.float32),
        w_se2=_pad2(w_se2, crp, cmp_).astype(jnp.bfloat16),
        w_proj=_pad2(w_proj, cmp_, coutp).astype(jnp.bfloat16),
        vec_co=vec_co)


def init_efficientnet(key, num_classes, width, depth, se_scale):
    channels = [int(c * width) for c in [32, 16, 24, 40, 80, 112, 192, 320, 1280]]
    repeats = [int(r * depth) for r in [1, 2, 2, 3, 3, 4, 1]]
    kernel_sizes = [3, 3, 5, 3, 5, 5, 3]
    strides = [1, 2, 2, 2, 1, 2, 1]

    blocks_cfg = []
    for stage in range(7):
        # stage2 is MBvo (expand=1) but, matching the reference module, it still has
        # the learned cin->cin 1x1 "expand" conv + BN + SiLU.
        expand = 1 if stage == 0 else 6
        cin, cout = channels[stage], channels[stage + 1]
        # matches PyTorch _make_Block: [stride] + [1]*(repeats-1)  (>=1 block even
        # when int(repeats*depth) == 0, exactly like the reference).
        s_list = [strides[stage]] + [1] * (repeats[stage] - 1)
        for s in s_list:
            blocks_cfg.append(dict(cin=cin, cout=cout, k=kernel_sizes[stage],
                                   stride=s, expand=expand))
            cin = cout

    keys = jax.random.split(key, len(blocks_cfg) + 3)
    c0, c0p = channels[0], _rup(channels[0])
    kw1, kb1 = jax.random.split(keys[0])
    w1 = jax.random.normal(kw1, (27, c0), jnp.float32) / np.sqrt(27.0)  # stage1 3x3
    s1, b1 = _bn_fold(kb1, c0)
    params = {
        "stage1": dict(w=_pad2(w1, 27, c0p).astype(jnp.bfloat16),
                       sb=jnp.stack([_pad1(s1, c0p), _pad1(b1, c0p)])),
        "blocks": [_init_block(keys[1 + i], c["cin"], c["cout"], c["k"],
                               c["expand"], se_scale)
                   for i, c in enumerate(blocks_cfg)],
    }
    c7, c8 = channels[7], channels[8]
    c7p, c8p, ncp = _rup(c7), _rup(c8), _rup(num_classes)
    kw9, kb9 = jax.random.split(keys[-2])
    w9 = jax.random.normal(kw9, (c7, c8), jnp.float32) / np.sqrt(c7)
    s9, b9 = _bn_fold(kb9, c8)
    params["stage9"] = dict(w=_pad2(w9, c7p, c8p).astype(jnp.bfloat16),
                            sb=jnp.stack([_pad1(s9, c8p), _pad1(b9, c8p)]))
    kh, kb = jax.random.split(keys[-1])
    wh = jax.random.normal(kh, (c8, num_classes), jnp.float32) / np.sqrt(c8)
    bh = 0.1 * jax.random.normal(kb, (num_classes,), jnp.float32)
    params["head_w"] = _pad2(wh, c8p, ncp).astype(jnp.bfloat16)
    params["head_b"] = _pad1(bh, ncp).reshape(1, -1)
    return params, blocks_cfg


# ----------------------------------------------------------------------------
# Full forward
# ----------------------------------------------------------------------------

def efficientnet_forward(x_nchw, params, blocks_cfg, scale, num_classes):
    x = upsample_bilinear(x_nchw, scale)                   # nn.Upsample (plain-JAX glue)
    x = jnp.transpose(x, (0, 2, 3, 1))                     # NCHW -> NHWC
    N = x.shape[0]

    # stage1: 3x3 stride-2 conv + BN via im2col (glue, bf16) + tiled Pallas matmul.
    # TODO(synk): fold the patch extraction into the kernel (halo'd input block,
    #             in-kernel taps) to avoid the 9x im2col tensor at real resolutions.
    cols, Ho, Wo = im2col(x, 3, 2, 1)
    cols = cols.reshape(N * Ho * Wo, -1).astype(jnp.bfloat16)
    y = matmul_bn(cols, params["stage1"]["w"], params["stage1"]["sb"])
    c0p = params["stage1"]["w"].shape[1]
    x = y.reshape(N, Ho * Wo, c0p)                         # (N, HW, C) bf16, lane-padded
    h, w = Ho, Wo

    # stages 2..8: fused MBvo / MBConv blocks, one pallas_call per block.
    for p, cfg in zip(params["blocks"], blocks_cfg):
        stride = cfg["stride"]
        cinp = p["w_exp"].shape[0]
        if stride > 1:
            # In this module the stride sits on the 1x1 expand conv (padding 0), which
            # is exactly spatial decimation of its input + a stride-1 1x1 conv.
            # TODO(synk): fold the decimation into the block's input DMA (strided
            #             index_map) to skip this extra XLA gather pass.
            x4 = x.reshape(N, h, w, cinp)[:, ::stride, ::stride, :]
            h, w = x4.shape[1], x4.shape[2]
            x = x4.reshape(N, h * w, cinp)
        shortcut = (stride == 1) and (cfg["cin"] == cfg["cout"])
        x = mbconv_apply(x, p, k=cfg["k"], ho=h, wo=w, shortcut=shortcut)

    # stage9 (1x1 conv + BN + SiLU) + avgpool + dropout (eval: identity) + linear.
    # TODO(synk): Dropout / stochastic-depth bernoulli / BN batch-stat updates are
    #             training-only behaviors; eval-mode (identity) semantics implemented.
    return head_apply(x, params["stage9"], params["head_w"], params["head_b"],
                      num_classes)


if __name__ == "__main__":
    key = jax.random.PRNGKey(0)
    num_classes, width, depth, scale, dropout, se_scale = 10, 0.25, 0.5, 2, 0.2, 4

    params, blocks_cfg = init_efficientnet(key, num_classes, width, depth, se_scale)
    x = jax.random.normal(jax.random.PRNGKey(0), (2, 3, 16, 16), jnp.float32)  # NCHW

    out = efficientnet_forward(x, params, blocks_cfg, scale, num_classes)
    out = jax.block_until_ready(out)
    assert out.shape == (2, num_classes), out.shape
    assert bool(jnp.all(jnp.isfinite(out)))
    print("KERNEL_OK")
</pallas_src>

<mosaic_0001>
module attributes {stable_mosaic.version = 11 : i64} {
  func.func @_matmul_bn_kernel(%arg0: i32, %arg1: i32, %arg2: memref<512x27xbf16, #tpu.memory_space<vmem>>, %arg3: memref<27x128xbf16, #tpu.memory_space<vmem>>, %arg4: memref<2x128xf32, #tpu.memory_space<vmem>>, %arg5: memref<512x128xbf16, #tpu.memory_space<vmem>>) attributes {dimension_semantics = [#tpu.dimension_semantics<parallel>, #tpu.dimension_semantics<parallel>], iteration_bounds = array<i64: 1, 1>, scalar_prefetch = 0 : i64, scratch_operands = 0 : i64, tpu.core_type = #tpu.core_type<tc>, window_params = [{transform_indices = @transform_0, window_bounds = array<i64: 512, 27>}, {transform_indices = @transform_1, window_bounds = array<i64: 27, 128>}, {transform_indices = @transform_2, window_bounds = array<i64: 2, 128>}, {transform_indices = @transform_3, window_bounds = array<i64: 512, 128>}]} {
    %c0 = arith.constant 0 : index
    %c0_0 = arith.constant 0 : index
    %0 = vector.load %arg2[%c0, %c0_0] : memref<512x27xbf16, #tpu.memory_space<vmem>>, vector<512x27xbf16>
    %c0_1 = arith.constant 0 : index
    %c0_2 = arith.constant 0 : index
    %1 = vector.load %arg3[%c0_1, %c0_2] : memref<27x128xbf16, #tpu.memory_space<vmem>>, vector<27x128xbf16>
    %cst = arith.constant dense<0.000000e+00> : vector<512x128xf32>
    %2 = tpu.matmul %0, %1, %cst {dimension_numbers = #tpu.dot_dimension_numbers<[1], [0], [0], [1], [0, 0, 1, 1], [], []>} : vector<512x27xbf16>, vector<27x128xbf16>, vector<512x128xf32> -> vector<512x128xf32>
    %c0_3 = arith.constant 0 : index
    %c0_4 = arith.constant 0 : index
    %3 = vector.load %arg4[%c0_3, %c0_4] : memref<2x128xf32, #tpu.memory_space<vmem>>, vector<2x128xf32>
    %4 = vector.extract_strided_slice %3 {offsets = [0, 0], sizes = [1, 128], strides = [1, 1]} : vector<2x128xf32> to vector<1x128xf32>
    %5 = vector.broadcast %4 : vector<1x128xf32> to vector<512x128xf32>
    %6 = arith.mulf %2, %5 : vector<512x128xf32>
    %7 = vector.extract_strided_slice %3 {offsets = [1, 0], sizes = [1, 128], strides = [1, 1]} : vector<2x128xf32> to vector<1x128xf32>
    %8 = vector.broadcast %7 : vector<1x128xf32> to vector<512x128xf32>
    %9 = arith.addf %6, %8 : vector<512x128xf32>
    %10 = arith.truncf %9 : vector<512x128xf32> to vector<512x128xbf16>
    %c0_5 = arith.constant 0 : index
    %c0_6 = arith.constant 0 : index
    %11 = vector.load %arg5[%c0_5, %c0_6] : memref<512x128xbf16, #tpu.memory_space<vmem>>, vector<512x128xbf16>
    tpu.vector_store %arg5[%c0_5, %c0_6], %10 {strides = array<i32>} : memref<512x128xbf16, #tpu.memory_space<vmem>>, vector<512x128xbf16>,
    return
  }
  func.func @transform_0(%arg0: i32, %arg1: i32) -> (i32, i32) {
    %c0_i32 = arith.constant 0 : i32
    %c0_i32_0 = arith.constant 0 : i32
    return %arg0, %c0_i32 : i32, i32
  }
  func.func @transform_1(%arg0: i32, %arg1: i32) -> (i32, i32) {
    %c0_i32 = arith.constant 0 : i32
    %c0_i32_0 = arith.constant 0 : i32
    return %c0_i32, %arg1 : i32, i32
  }
  func.func @transform_2(%arg0: i32, %arg1: i32) -> (i32, i32) {
    %c0_i32 = arith.constant 0 : i32
    %c0_i32_0 = arith.constant 0 : i32
    return %c0_i32, %arg1 : i32, i32
  }
  func.func @transform_3(%arg0: i32, %arg1: i32) -> (i32, i32) {
    %c0_i32 = arith.constant 0 : i32
    return %arg0, %arg1 : i32, i32
  }
}

</mosaic_0001>

<bundles_post_ra>
// kernel: tpu_custom_call.1
= control target key start
LH: loop header
LB: loop body
LE: loop exit
PB: predicated region body
PF: predicated region fallthrough
CT: control target
= control target key end

     0   :  { %vm352_vm0 = vcmask 1044480   ;;  %vm353_vm1 = vcmask 1045504   ;;  %v1234_v3 = vmov 65535   ;;  %s1533_s0 = inlined_call_operand.vmem [shape: bf16[512,27], index: 0, kind: input, shape index: {}]   ;;  %s1534_s1 = inlined_call_operand.vmem [shape: bf16[27,128], index: 1, kind: input, shape index: {}]   ;;  %s1535_s2 = inlined_call_operand.vmem [shape: f32[2,128], index: 2, kind: input, shape index: {}]   ;;  %s1536_s3 = inlined_call_operand.hbm [shape: bf16[512,128], index: 3, kind: output, shape index: {}]  }
   0x1   :  { %v939_v0 = vld [vmem:[%s1534_s1 + $0x8] sm:$0xf]  ;;  %v1006_v1 = vld [vmem:[%s1534_s1 + $0x8] sm:$0x30]  ;;  %v354_v4 = vsel %vm352_vm0, 4294967295, %v1234_v3 }
   0x2   :  { %v940_v2 = vor.u32 %v1006_v1, %v939_v0  ;;  %v355_v5 = vsel %vm353_vm1, %v354_v4, 0 }
   0x4   :  { %v357_v6 = vand.u32 %v940_v2, %v355_v5 }
   0x5   :  { %8 = vsyncpa [#allocation3], 0  ;;  %v1005_v7 = vld [vmem:[%s1534_s1] sm:$0xff]  ;;  %vm255_vm2 = vcmask 220160   ;;  %v974_v12 = vld [vmem:[%s1533_s0 + $0x8] sm:$0xff]  ;;  %s793_s29 = sshll.u32 %s1536_s3, 4  ;;  %s794_s29 = int_to_ptr.hbm [resolvable:$true] %s793_s29 }
   0x6   :  { %365 = vmatpush.bf16.msra.mxu0 %v357_v6  ;;  %1198 = vmatpush.bf16.msra.mxu1 %v357_v6  ;;  %v973_v8 = vld [vmem:[%s1533_s0] sm:$0xff]  ;;  %v982_v13 = vld [vmem:[%s1533_s0 + $0x48] sm:$0xff]  ;;  %v975_v16 = vld [vmem:[%s1533_s0 + $0x10] sm:$0xff]  ;;  %s1236_s30 = smov 64   ;;  %s1237_s4 = smov 4  }
   0x7   :  { %1199 = vmatpush.bf16.msra.mxu2 %v357_v6  ;;  %1200 = vmatpush.bf16.msra.mxu3 %v357_v6  ;;  %v981_v9 = vld [vmem:[%s1533_s0 + $0x40] sm:$0xff]  ;;  %v990_v14 = vld [vmem:[%s1533_s0 + $0x88] sm:$0xff]  ;;  %v983_v17 = vld [vmem:[%s1533_s0 + $0x50] sm:$0xff] }
   0x8   :  { %v989_v10 = vld [vmem:[%s1533_s0 + $0x80] sm:$0xff]  ;;  %v998_v15 = vld [vmem:[%s1533_s0 + $0xc8] sm:$0xff]  ;;  %v991_v18 = vld [vmem:[%s1533_s0 + $0x90] sm:$0xff] }
   0x9   :  { %v997_v11 = vld [vmem:[%s1533_s0 + $0xc0] sm:$0xff]  ;;  %v999_v19 = vld [vmem:[%s1533_s0 + $0xd0] sm:$0xff]  ;;  %v976_v20 = vld [vmem:[%s1533_s0 + $0x18] sm:$0xff] }
   0xa   :  { %366 = vmatpush.bf16.msra.mxu0 %v1005_v7  ;;  %1201 = vmatpush.bf16.msra.mxu1 %v1005_v7  ;;  %v984_v21 = vld [vmem:[%s1533_s0 + $0x58] sm:$0xff]  ;;  %v977_v24 = vld [vmem:[%s1533_s0 + $0x20] sm:$0xff]  ;;  %v978_v28 = vld [vmem:[%s1533_s0 + $0x28] sm:$0xff] }
   0xb   :  { %1202 = vmatpush.bf16.msra.mxu2 %v1005_v7  ;;  %1203 = vmatpush.bf16.msra.mxu3 %v1005_v7  ;;  %v992_v22 = vld [vmem:[%s1533_s0 + $0x98] sm:$0xff]  ;;  %v985_v25 = vld [vmem:[%s1533_s0 + $0x60] sm:$0xff]  ;;  %v986_v29 = vld [vmem:[%s1533_s0 + $0x68] sm:$0xff] }
   0xc   :  { %v1000_v23 = vld [vmem:[%s1533_s0 + $0xd8] sm:$0xff]  ;;  %v993_v26 = vld [vmem:[%s1533_s0 + $0xa0] sm:$0xff]  ;;  %v994_v30 = vld [vmem:[%s1533_s0 + $0xa8] sm:$0xff] }
   0xd   :  { %941 = vmatmul.msk.bf16.vlgmr.msra.gmra.mxu0 %vm255_vm2, %v973_v8  ;;  %949 = vmatmul.msk.bf16.vlgmr.msra.gmra.mxu1 %vm255_vm2, %v981_v9  ;;  %v1001_v27 = vld [vmem:[%s1533_s0 + $0xe0] sm:$0xff]  ;;  %v1002_v31 = vld [vmem:[%s1533_s0 + $0xe8] sm:$0xff]  ;;  %v979_v32 = vld [vmem:[%s1533_s0 + $0x30] sm:$0xff] }
   0xe   :  { %957 = vmatmul.msk.bf16.vlgmr.msra.gmra.mxu2 %vm255_vm2, %v989_v10  ;;  %965 = vmatmul.msk.bf16.vlgmr.msra.gmra.mxu3 %vm255_vm2, %v997_v11  ;;  %v987_v33 = vld [vmem:[%s1533_s0 + $0x70] sm:$0xff]  ;;  %v980_v36 = vld [vmem:[%s1533_s0 + $0x38] sm:$0xff]  ;;  %v528_v41 = vld [vmem:[%s1535_s2] sm:$0x3] }
   0xf   :  { %v995_v34 = vld [vmem:[%s1533_s0 + $0xb0] sm:$0xff]  ;;  %v988_v37 = vld [vmem:[%s1533_s0 + $0x78] sm:$0xff]  ;;  %v1398_v43 = vperm.slane %v528_v41, 0  ;;  %v1401_v45 = vperm.slane %v528_v41, 1 }
  0x10   :  { %v1003_v35 = vld [vmem:[%s1533_s0 + $0xf0] sm:$0xff]  ;;  %v996_v38 = vld [vmem:[%s1533_s0 + $0xb8] sm:$0xff] }
  0x11   :  { %v1004_v39 = vld [vmem:[%s1533_s0 + $0xf8] sm:$0xff]  ;;  %s1235_s0 = smov [#allocation2]  }
  0x12   :  { %s791_s2 = sshll.u32 %s1235_s0, 4  ;;  %s792_s2 = int_to_ptr.vmem [resolvable:$true] %s791_s2 }
  0x1d   :  { %942 = vmatmul.msk.bf16.gmra.mxu0 %vm255_vm2, %v974_v12  ;;  %950 = vmatmul.msk.bf16.gmra.mxu1 %vm255_vm2, %v982_v13 }
  0x1e   :  { %958 = vmatmul.msk.bf16.gmra.mxu2 %vm255_vm2, %v990_v14  ;;  %966 = vmatmul.msk.bf16.gmra.mxu3 %vm255_vm2, %v998_v15 }
  0x2d   :  { %943 = vmatmul.msk.bf16.gmra.mxu0 %vm255_vm2, %v975_v16  ;;  %951 = vmatmul.msk.bf16.gmra.mxu1 %vm255_vm2, %v983_v17 }
  0x2e   :  { %959 = vmatmul.msk.bf16.gmra.mxu2 %vm255_vm2, %v991_v18  ;;  %967 = vmatmul.msk.bf16.gmra.mxu3 %vm255_vm2, %v999_v19 }
  0x3d   :  { %944 = vmatmul.msk.bf16.gmra.mxu0 %vm255_vm2, %v976_v20  ;;  %952 = vmatmul.msk.bf16.gmra.mxu1 %vm255_vm2, %v984_v21 }
  0x3e   :  { %960 = vmatmul.msk.bf16.gmra.mxu2 %vm255_vm2, %v992_v22  ;;  %968 = vmatmul.msk.bf16.gmra.mxu3 %vm255_vm2, %v1000_v23 }
  0x4d   :  { %945 = vmatmul.msk.bf16.gmra.mxu0 %vm255_vm2, %v977_v24  ;;  %953 = vmatmul.msk.bf16.gmra.mxu1 %vm255_vm2, %v985_v25 }
  0x4e   :  { %961 = vmatmul.msk.bf16.gmra.mxu2 %vm255_vm2, %v993_v26  ;;  %969 = vmatmul.msk.bf16.gmra.mxu3 %vm255_vm2, %v1001_v27 }
  0x5d   :  { %946 = vmatmul.msk.bf16.gmra.mxu0 %vm255_vm2, %v978_v28  ;;  %954 = vmatmul.msk.bf16.gmra.mxu1 %vm255_vm2, %v986_v29 }
  0x5e   :  { %962 = vmatmul.msk.bf16.gmra.mxu2 %vm255_vm2, %v994_v30  ;;  %970 = vmatmul.msk.bf16.gmra.mxu3 %vm255_vm2, %v1002_v31 }
  0x6d   :  { %947 = vmatmul.msk.bf16.gmra.mxu0 %vm255_vm2, %v979_v32  ;;  %955 = vmatmul.msk.bf16.gmra.mxu1 %vm255_vm2, %v987_v33 }
  0x6e   :  { %963 = vmatmul.msk.bf16.gmra.mxu2 %vm255_vm2, %v995_v34  ;;  %971 = vmatmul.msk.bf16.gmra.mxu3 %vm255_vm2, %v1003_v35 }
  0x7d   :  { %948 = vmatmul.msk.bf16.gmra.mxu0 %vm255_vm2, %v980_v36  ;;  %956 = vmatmul.msk.bf16.gmra.mxu1 %vm255_vm2, %v988_v37 }
  0x7e   :  { %964 = vmatmul.msk.bf16.gmra.mxu2 %vm255_vm2, %v996_v38  ;;  %972 = vmatmul.msk.bf16.gmra.mxu3 %vm255_vm2, %v1004_v39 }
  0x8a   :  { %v368_v40 = vpop.f32.mrf.mxu0  ;;  %v408_v42 = vpop.f32.mrf.mxu1 }
  0x8b   :  { %v530_v44 = vmul.f32 %v1398_v43, %v368_v40  ;;  %v546_v46 = vmul.f32 %v1398_v43, %v408_v42 }
  0x8d   :  { %v595_v53 = vadd.f32 %v1401_v45, %v530_v44  ;;  %v611_v54 = vadd.f32 %v1401_v45, %v546_v46 }
  0x91   :  { %v448_v47 = vpop.f32.mrf.mxu2  ;;  %v488_v48 = vpop.f32.mrf.mxu3 }
  0x92   :  { %v370_v49 = vpop.f32.mrf.mxu0  ;;  %v410_v50 = vpop.f32.mrf.mxu1  ;;  %v562_v59 = vmul.f32 %v1398_v43, %v448_v47  ;;  %v578_v60 = vmul.f32 %v1398_v43, %v488_v48 }
  0x93   :  { %v531_v51 = vmul.f32 %v1398_v43, %v370_v49  ;;  %v547_v52 = vmul.f32 %v1398_v43, %v410_v50 }
  0x94   :  { %v627_v3 = vadd.f32 %v1401_v45, %v562_v59  ;;  %v643_v4 = vadd.f32 %v1401_v45, %v578_v60 }
  0x95   :  { %v596_v55 = vadd.f32 %v1401_v45, %v531_v51  ;;  %v612_v56 = vadd.f32 %v1401_v45, %v547_v52 }
  0x97   :  { %v1010_v57 = vpack.c.bf16 %v596_v55, %v595_v53  ;;  %v1050_v58 = vpack.c.bf16 %v612_v56, %v611_v54 }
  0x99   :  { %1011 = vst [vmem:[#allocation2] sm:$0xff] %v1010_v57   ;;  %v450_v61 = vpop.f32.mrf.mxu2  ;;  %v490_v62 = vpop.f32.mrf.mxu3 }
  0x9a   :  { %1174 = vst [vmem:[#allocation2 + $0x40] sm:$0xff] %v1050_v58   ;;  %v563_v63 = vmul.f32 %v1398_v43, %v450_v61  ;;  %v579_v0 = vmul.f32 %v1398_v43, %v490_v62  ;;  %v373_v1 = vpop.f32.mrf.mxu0  ;;  %v413_v2 = vpop.f32.mrf.mxu1 }
  0x9b   :  { %v532_v9 = vmul.f32 %v1398_v43, %v373_v1  ;;  %v548_v10 = vmul.f32 %v1398_v43, %v413_v2 }
  0x9c   :  { %v628_v5 = vadd.f32 %v1401_v45, %v563_v63  ;;  %v644_v6 = vadd.f32 %v1401_v45, %v579_v0 }
  0x9d   :  { %v597_v17 = vadd.f32 %v1401_v45, %v532_v9  ;;  %v613_v18 = vadd.f32 %v1401_v45, %v548_v10 }
  0x9e   :  { %v1090_v7 = vpack.c.bf16 %v628_v5, %v627_v3  ;;  %v1130_v8 = vpack.c.bf16 %v644_v6, %v643_v4 }
  0xa0   :  { %1182 = vst [vmem:[#allocation2 + $0x80] sm:$0xff] %v1090_v7  }
  0xa1   :  { %1190 = vst [vmem:[#allocation2 + $0xc0] sm:$0xff] %v1130_v8   ;;  %v453_v11 = vpop.f32.mrf.mxu2  ;;  %v493_v12 = vpop.f32.mrf.mxu3 }
  0xa2   :  { %v375_v13 = vpop.f32.mrf.mxu0  ;;  %v415_v14 = vpop.f32.mrf.mxu1  ;;  %v564_v23 = vmul.f32 %v1398_v43, %v453_v11  ;;  %v580_v24 = vmul.f32 %v1398_v43, %v493_v12 }
  0xa3   :  { %v533_v15 = vmul.f32 %v1398_v43, %v375_v13  ;;  %v549_v16 = vmul.f32 %v1398_v43, %v415_v14 }
  0xa4   :  { %v629_v31 = vadd.f32 %v1401_v45, %v564_v23  ;;  %v645_v32 = vadd.f32 %v1401_v45, %v580_v24 }
  0xa5   :  { %v598_v19 = vadd.f32 %v1401_v45, %v533_v15  ;;  %v614_v20 = vadd.f32 %v1401_v45, %v549_v16 }
  0xa7   :  { %v1015_v21 = vpack.c.bf16 %v598_v19, %v597_v17  ;;  %v1055_v22 = vpack.c.bf16 %v614_v20, %v613_v18 }
  0xa9   :  { %1167 = vst [vmem:[#allocation2 + $0x8] sm:$0xff] %v1015_v21   ;;  %v455_v25 = vpop.f32.mrf.mxu2  ;;  %v495_v26 = vpop.f32.mrf.mxu3 }
  0xaa   :  { %1175 = vst [vmem:[#allocation2 + $0x48] sm:$0xff] %v1055_v22   ;;  %v565_v27 = vmul.f32 %v1398_v43, %v455_v25  ;;  %v581_v28 = vmul.f32 %v1398_v43, %v495_v26  ;;  %v378_v29 = vpop.f32.mrf.mxu0  ;;  %v418_v30 = vpop.f32.mrf.mxu1 }
  0xab   :  { %v534_v37 = vmul.f32 %v1398_v43, %v378_v29  ;;  %v550_v38 = vmul.f32 %v1398_v43, %v418_v30 }
  0xac   :  { %v630_v33 = vadd.f32 %v1401_v45, %v565_v27  ;;  %v646_v34 = vadd.f32 %v1401_v45, %v581_v28 }
  0xad   :  { %v599_v47 = vadd.f32 %v1401_v45, %v534_v37  ;;  %v615_v48 = vadd.f32 %v1401_v45, %v550_v38 }
  0xae   :  { %v1095_v35 = vpack.c.bf16 %v630_v33, %v629_v31  ;;  %v1135_v36 = vpack.c.bf16 %v646_v34, %v645_v32 }
  0xb0   :  { %1183 = vst [vmem:[#allocation2 + $0x88] sm:$0xff] %v1095_v35  }
  0xb1   :  { %1191 = vst [vmem:[#allocation2 + $0xc8] sm:$0xff] %v1135_v36   ;;  %v458_v39 = vpop.f32.mrf.mxu2  ;;  %v498_v40 = vpop.f32.mrf.mxu3 }
  0xb2   :  { %v380_v41 = vpop.f32.mrf.mxu0  ;;  %v420_v42 = vpop.f32.mrf.mxu1  ;;  %v566_v53 = vmul.f32 %v1398_v43, %v458_v39  ;;  %v582_v54 = vmul.f32 %v1398_v43, %v498_v40 }
  0xb3   :  { %v535_v44 = vmul.f32 %v1398_v43, %v380_v41  ;;  %v551_v46 = vmul.f32 %v1398_v43, %v420_v42 }
  0xb4   :  { %v631_v61 = vadd.f32 %v1401_v45, %v566_v53  ;;  %v647_v62 = vadd.f32 %v1401_v45, %v582_v54 }
  0xb5   :  { %v600_v49 = vadd.f32 %v1401_v45, %v535_v44  ;;  %v616_v50 = vadd.f32 %v1401_v45, %v551_v46 }
  0xb7   :  { %v1020_v51 = vpack.c.bf16 %v600_v49, %v599_v47  ;;  %v1060_v52 = vpack.c.bf16 %v616_v50, %v615_v48 }
  0xb9   :  { %1168 = vst [vmem:[#allocation2 + $0x10] sm:$0xff] %v1020_v51   ;;  %v460_v55 = vpop.f32.mrf.mxu2  ;;  %v500_v56 = vpop.f32.mrf.mxu3 }
  0xba   :  { %1176 = vst [vmem:[#allocation2 + $0x50] sm:$0xff] %v1060_v52   ;;  %v567_v57 = vmul.f32 %v1398_v43, %v460_v55  ;;  %v583_v58 = vmul.f32 %v1398_v43, %v500_v56  ;;  %v383_v59 = vpop.f32.mrf.mxu0  ;;  %v423_v60 = vpop.f32.mrf.mxu1 }
  0xbb   :  { %v536_v3 = vmul.f32 %v1398_v43, %v383_v59  ;;  %v552_v4 = vmul.f32 %v1398_v43, %v423_v60 }
  0xbc   :  { %v632_v63 = vadd.f32 %v1401_v45, %v567_v57  ;;  %v648_v0 = vadd.f32 %v1401_v45, %v583_v58 }
  0xbd   :  { %v601_v11 = vadd.f32 %v1401_v45, %v536_v3  ;;  %v617_v12 = vadd.f32 %v1401_v45, %v552_v4 }
  0xbe   :  { %v1100_v1 = vpack.c.bf16 %v632_v63, %v631_v61  ;;  %v1140_v2 = vpack.c.bf16 %v648_v0, %v647_v62 }
  0xc0   :  { %1184 = vst [vmem:[#allocation2 + $0x90] sm:$0xff] %v1100_v1  }
  0xc1   :  { %1192 = vst [vmem:[#allocation2 + $0xd0] sm:$0xff] %v1140_v2   ;;  %v463_v5 = vpop.f32.mrf.mxu2  ;;  %v503_v6 = vpop.f32.mrf.mxu3 }
  0xc2   :  { %v385_v7 = vpop.f32.mrf.mxu0  ;;  %v425_v8 = vpop.f32.mrf.mxu1  ;;  %v568_v17 = vmul.f32 %v1398_v43, %v463_v5  ;;  %v584_v18 = vmul.f32 %v1398_v43, %v503_v6 }
  0xc3   :  { %v537_v9 = vmul.f32 %v1398_v43, %v385_v7  ;;  %v553_v10 = vmul.f32 %v1398_v43, %v425_v8 }
  0xc4   :  { %v633_v25 = vadd.f32 %v1401_v45, %v568_v17  ;;  %v649_v26 = vadd.f32 %v1401_v45, %v584_v18 }
  0xc5   :  { %v602_v13 = vadd.f32 %v1401_v45, %v537_v9  ;;  %v618_v14 = vadd.f32 %v1401_v45, %v553_v10 }
  0xc7   :  { %v1025_v15 = vpack.c.bf16 %v602_v13, %v601_v11  ;;  %v1065_v16 = vpack.c.bf16 %v618_v14, %v617_v12 }
  0xc9   :  { %1169 = vst [vmem:[#allocation2 + $0x18] sm:$0xff] %v1025_v15   ;;  %v465_v19 = vpop.f32.mrf.mxu2  ;;  %v505_v20 = vpop.f32.mrf.mxu3 }
  0xca   :  { %1177 = vst [vmem:[#allocation2 + $0x58] sm:$0xff] %v1065_v16   ;;  %v569_v21 = vmul.f32 %v1398_v43, %v465_v19  ;;  %v585_v22 = vmul.f32 %v1398_v43, %v505_v20  ;;  %v388_v23 = vpop.f32.mrf.mxu0  ;;  %v428_v24 = vpop.f32.mrf.mxu1 }
  0xcb   :  { %v538_v31 = vmul.f32 %v1398_v43, %v388_v23  ;;  %v554_v32 = vmul.f32 %v1398_v43, %v428_v24 }
  0xcc   :  { %v634_v27 = vadd.f32 %v1401_v45, %v569_v21  ;;  %v650_v28 = vadd.f32 %v1401_v45, %v585_v22 }
  0xcd   :  { %v603_v39 = vadd.f32 %v1401_v45, %v538_v31  ;;  %v619_v40 = vadd.f32 %v1401_v45, %v554_v32 }
  0xce   :  { %v1105_v29 = vpack.c.bf16 %v634_v27, %v633_v25  ;;  %v1145_v30 = vpack.c.bf16 %v650_v28, %v649_v26 }
  0xd0   :  { %1185 = vst [vmem:[#allocation2 + $0x98] sm:$0xff] %v1105_v29  }
  0xd1   :  { %1193 = vst [vmem:[#allocation2 + $0xd8] sm:$0xff] %v1145_v30   ;;  %v468_v33 = vpop.f32.mrf.mxu2  ;;  %v508_v34 = vpop.f32.mrf.mxu3 }
  0xd2   :  { %v390_v35 = vpop.f32.mrf.mxu0  ;;  %v430_v36 = vpop.f32.mrf.mxu1  ;;  %v570_v47 = vmul.f32 %v1398_v43, %v468_v33  ;;  %v586_v48 = vmul.f32 %v1398_v43, %v508_v34 }
  0xd3   :  { %v539_v37 = vmul.f32 %v1398_v43, %v390_v35  ;;  %v555_v38 = vmul.f32 %v1398_v43, %v430_v36 }
  0xd4   :  { %v635_v55 = vadd.f32 %v1401_v45, %v570_v47  ;;  %v651_v56 = vadd.f32 %v1401_v45, %v586_v48 }
  0xd5   :  { %v604_v41 = vadd.f32 %v1401_v45, %v539_v37  ;;  %v620_v42 = vadd.f32 %v1401_v45, %v555_v38 }
  0xd7   :  { %v1030_v44 = vpack.c.bf16 %v604_v41, %v603_v39  ;;  %v1070_v46 = vpack.c.bf16 %v620_v42, %v619_v40 }
  0xd9   :  { %1170 = vst [vmem:[#allocation2 + $0x20] sm:$0xff] %v1030_v44   ;;  %v470_v49 = vpop.f32.mrf.mxu2  ;;  %v510_v50 = vpop.f32.mrf.mxu3 }
  0xda   :  { %1178 = vst [vmem:[#allocation2 + $0x60] sm:$0xff] %v1070_v46   ;;  %v571_v51 = vmul.f32 %v1398_v43, %v470_v49  ;;  %v587_v52 = vmul.f32 %v1398_v43, %v510_v50  ;;  %v393_v53 = vpop.f32.mrf.mxu0  ;;  %v433_v54 = vpop.f32.mrf.mxu1 }
  0xdb   :  { %v540_v61 = vmul.f32 %v1398_v43, %v393_v53  ;;  %v556_v62 = vmul.f32 %v1398_v43, %v433_v54 }
  0xdc   :  { %v636_v57 = vadd.f32 %v1401_v45, %v571_v51  ;;  %v652_v58 = vadd.f32 %v1401_v45, %v587_v52 }
  0xdd   :  { %v605_v5 = vadd.f32 %v1401_v45, %v540_v61  ;;  %v621_v6 = vadd.f32 %v1401_v45, %v556_v62 }
  0xde   :  { %v1110_v59 = vpack.c.bf16 %v636_v57, %v635_v55  ;;  %v1150_v60 = vpack.c.bf16 %v652_v58, %v651_v56 }
  0xe0   :  { %1186 = vst [vmem:[#allocation2 + $0xa0] sm:$0xff] %v1110_v59  }
  0xe1   :  { %1194 = vst [vmem:[#allocation2 + $0xe0] sm:$0xff] %v1150_v60   ;;  %v473_v63 = vpop.f32.mrf.mxu2  ;;  %v513_v0 = vpop.f32.mrf.mxu3 }
  0xe2   :  { %v395_v1 = vpop.f32.mrf.mxu0  ;;  %v435_v2 = vpop.f32.mrf.mxu1  ;;  %v572_v11 = vmul.f32 %v1398_v43, %v473_v63  ;;  %v588_v12 = vmul.f32 %v1398_v43, %v513_v0 }
  0xe3   :  { %v541_v3 = vmul.f32 %v1398_v43, %v395_v1  ;;  %v557_v4 = vmul.f32 %v1398_v43, %v435_v2 }
  0xe4   :  { %v637_v19 = vadd.f32 %v1401_v45, %v572_v11  ;;  %v653_v20 = vadd.f32 %v1401_v45, %v588_v12 }
  0xe5   :  { %v606_v7 = vadd.f32 %v1401_v45, %v541_v3  ;;  %v622_v8 = vadd.f32 %v1401_v45, %v557_v4 }
  0xe7   :  { %v1035_v9 = vpack.c.bf16 %v606_v7, %v605_v5  ;;  %v1075_v10 = vpack.c.bf16 %v622_v8, %v621_v6 }
  0xe9   :  { %1171 = vst [vmem:[#allocation2 + $0x28] sm:$0xff] %v1035_v9   ;;  %v475_v13 = vpop.f32.mrf.mxu2  ;;  %v515_v14 = vpop.f32.mrf.mxu3 }
  0xea   :  { %1179 = vst [vmem:[#allocation2 + $0x68] sm:$0xff] %v1075_v10   ;;  %v573_v15 = vmul.f32 %v1398_v43, %v475_v13  ;;  %v589_v16 = vmul.f32 %v1398_v43, %v515_v14  ;;  %v398_v17 = vpop.f32.mrf.mxu0  ;;  %v438_v18 = vpop.f32.mrf.mxu1 }
  0xeb   :  { %v542_v25 = vmul.f32 %v1398_v43, %v398_v17  ;;  %v558_v26 = vmul.f32 %v1398_v43, %v438_v18 }
  0xec   :  { %v638_v21 = vadd.f32 %v1401_v45, %v573_v15  ;;  %v654_v22 = vadd.f32 %v1401_v45, %v589_v16 }
  0xed   :  { %v607_v33 = vadd.f32 %v1401_v45, %v542_v25  ;;  %v623_v34 = vadd.f32 %v1401_v45, %v558_v26 }
  0xee   :  { %v1115_v23 = vpack.c.bf16 %v638_v21, %v637_v19  ;;  %v1155_v24 = vpack.c.bf16 %v654_v22, %v653_v20 }
  0xf0   :  { %1187 = vst [vmem:[#allocation2 + $0xa8] sm:$0xff] %v1115_v23  }
  0xf1   :  { %1195 = vst [vmem:[#allocation2 + $0xe8] sm:$0xff] %v1155_v24   ;;  %v478_v27 = vpop.f32.mrf.mxu2  ;;  %v518_v28 = vpop.f32.mrf.mxu3 }
  0xf2   :  { %v400_v29 = vpop.f32.mrf.mxu0  ;;  %v440_v30 = vpop.f32.mrf.mxu1  ;;  %v574_v39 = vmul.f32 %v1398_v43, %v478_v27  ;;  %v590_v40 = vmul.f32 %v1398_v43, %v518_v28 }
  0xf3   :  { %v543_v31 = vmul.f32 %v1398_v43, %v400_v29  ;;  %v559_v32 = vmul.f32 %v1398_v43, %v440_v30 }
  0xf4   :  { %v639_v49 = vadd.f32 %v1401_v45, %v574_v39  ;;  %v655_v50 = vadd.f32 %v1401_v45, %v590_v40 }
  0xf5   :  { %v608_v35 = vadd.f32 %v1401_v45, %v543_v31  ;;  %v624_v36 = vadd.f32 %v1401_v45, %v559_v32 }
  0xf7   :  { %v1040_v37 = vpack.c.bf16 %v608_v35, %v607_v33  ;;  %v1080_v38 = vpack.c.bf16 %v624_v36, %v623_v34 }
  0xf9   :  { %1172 = vst [vmem:[#allocation2 + $0x30] sm:$0xff] %v1040_v37   ;;  %v480_v41 = vpop.f32.mrf.mxu2  ;;  %v520_v42 = vpop.f32.mrf.mxu3 }
  0xfa   :  { %1180 = vst [vmem:[#allocation2 + $0x70] sm:$0xff] %v1080_v38   ;;  %v575_v44 = vmul.f32 %v1398_v43, %v480_v41  ;;  %v591_v46 = vmul.f32 %v1398_v43, %v520_v42  ;;  %v403_v47 = vpop.f32.mrf.mxu0  ;;  %v443_v48 = vpop.f32.mrf.mxu1 }
  0xfb   :  { %v544_v55 = vmul.f32 %v1398_v43, %v403_v47  ;;  %v560_v56 = vmul.f32 %v1398_v43, %v443_v48 }
  0xfc   :  { %v640_v51 = vadd.f32 %v1401_v45, %v575_v44  ;;  %v656_v52 = vadd.f32 %v1401_v45, %v591_v46 }
  0xfd   :  { %v609_v63 = vadd.f32 %v1401_v45, %v544_v55  ;;  %v625_v0 = vadd.f32 %v1401_v45, %v560_v56 }
  0xfe   :  { %v1120_v53 = vpack.c.bf16 %v640_v51, %v639_v49  ;;  %v1160_v54 = vpack.c.bf16 %v656_v52, %v655_v50 }
 0x100   :  { %1188 = vst [vmem:[#allocation2 + $0xb0] sm:$0xff] %v1120_v53  }
 0x101   :  { %1196 = vst [vmem:[#allocation2 + $0xf0] sm:$0xff] %v1160_v54   ;;  %v483_v57 = vpop.f32.mrf.mxu2  ;;  %v523_v58 = vpop.f32.mrf.mxu3 }
 0x102   :  { %v405_v59 = vpop.f32.mrf.mxu0  ;;  %v445_v60 = vpop.f32.mrf.mxu1  ;;  %v576_v5 = vmul.f32 %v1398_v43, %v483_v57  ;;  %v592_v6 = vmul.f32 %v1398_v43, %v523_v58 }
 0x103   :  { %v545_v61 = vmul.f32 %v1398_v43, %v405_v59  ;;  %v561_v62 = vmul.f32 %v1398_v43, %v445_v60 }
 0x104   :  { %v641_v11 = vadd.f32 %v1401_v45, %v576_v5  ;;  %v657_v12 = vadd.f32 %v1401_v45, %v592_v6 }
 0x105   :  { %v610_v1 = vadd.f32 %v1401_v45, %v545_v61  ;;  %v626_v2 = vadd.f32 %v1401_v45, %v561_v62 }
 0x107   :  { %v1045_v3 = vpack.c.bf16 %v610_v1, %v609_v63  ;;  %v1085_v4 = vpack.c.bf16 %v626_v2, %v625_v0 }
 0x109   :  { %1173 = vst [vmem:[#allocation2 + $0x38] sm:$0xff] %v1045_v3   ;;  %v485_v7 = vpop.f32.mrf.mxu2  ;;  %v525_v8 = vpop.f32.mrf.mxu3 }
 0x10a   :  { %1181 = vst [vmem:[#allocation2 + $0x78] sm:$0xff] %v1085_v4   ;;  %v577_v9 = vmul.f32 %v1398_v43, %v485_v7  ;;  %v593_v10 = vmul.f32 %v1398_v43, %v525_v8 }
 0x10c   :  { %v642_v13 = vadd.f32 %v1401_v45, %v577_v9  ;;  %v658_v14 = vadd.f32 %v1401_v45, %v593_v10 }
 0x10e   :  { %v1125_v15 = vpack.c.bf16 %v642_v13, %v641_v11  ;;  %v1165_v16 = vpack.c.bf16 %v658_v14, %v657_v12 }
 0x110   :  { %1189 = vst [vmem:[#allocation2 + $0xb8] sm:$0xff] %v1125_v15  }
 0x111   :  { %1197 = vst [vmem:[#allocation2 + $0xf8] sm:$0xff] %v1165_v16  }
 0x112   :  { %799 = dma.vmem_to_hbm [thread:$0]  %s792_s2, 4096, %s794_s29, [#allocation3], %s1236_s30, %s1236_s30, %s1237_s4  }
 0x113   :  { %1232 = dma.done.wait [#allocation3], 4096  }
 0x114   :  { %1233 = vsyncadd [#allocation3], 4294963200 }
 0x115   :  { %804 = vsyncpa [#allocation3], 1 }

</bundles_post_ra>
